<compile_context>
chip_gen: v6e
topology: v6e:2x2x1
jax: 0.10.0
libtpu: 0.0.40
codegen_flags: <defaults>
</compile_context>

<pallas_src>
import functools
import math

import jax
import jax.numpy as jnp
from jax.experimental import pallas as pl
from jax.experimental.pallas import tpu as pltpu

# ----- model config (small, consistent with the ViT-style module) -----
HIDDEN = 32          # model_config.hidden_size
NUM_HEADS = 4        # model_config.num_heads
HEAD_DIM = HIDDEN // NUM_HEADS
MLP_DIM = 64         # model_config.mlp_dim
SEQ = 8
BATCH = 2
EPS = 1e-5           # nn.LayerNorm default eps

# ----- packed parameter slab layout (row offsets; lane width P_COLS) -----
R_WQ, R_WK, R_WV, R_WP = 0, 32, 64, 96     # (HIDDEN, HIDDEN) each, cols 0:HIDDEN
R_W1 = 128                                  # (HIDDEN, MLP_DIM)
R_W2 = 160                                  # (MLP_DIM, HIDDEN)
R_VEC = 224                                 # 10 rows of (1, .) vectors
R_MASK = 240                                # (NUM_HEADS*SEQ, HIDDEN) 0/1 head mask
P_ROWS, P_COLS = 272, 64

R_G1, R_B1 = R_VEC + 0, R_VEC + 1
R_BQ, R_BK, R_BV, R_BP = R_VEC + 2, R_VEC + 3, R_VEC + 4, R_VEC + 5
R_G2, R_B2 = R_VEC + 6, R_VEC + 7
R_BF1, R_BF2 = R_VEC + 8, R_VEC + 9


def _layernorm(x, gamma, beta):
    # One-pass stats: sum(x) and sum(x^2) are independent reductions.
    mean = jnp.mean(x, axis=-1, keepdims=True)
    msq = jnp.mean(x * x, axis=-1, keepdims=True)
    var = msq - mean * mean
    return (x - mean) * jax.lax.rsqrt(var + EPS) * gamma + beta


def _gelu_exact(x):
    # nn.GELU() default is the exact (erf-based) GELU.
    return 0.5 * x * (1.0 + jax.lax.erf(x * (1.0 / math.sqrt(2.0))))


def transformer_block_kernel(x_ref, p_ref, out_ref, *, bb):
    x = x_ref[...].astype(jnp.float32)                       # (bb*SEQ, HIDDEN)

    def vec(row, width=HIDDEN):                               # (1, width) param row
        return p_ref[row:row + 1, 0:width]

    # ---------------- attention branch ----------------
    y = _layernorm(x, vec(R_G1), vec(R_B1))

    wq = p_ref[R_WQ:R_WQ + HIDDEN, 0:HIDDEN]                  # 1/sqrt(hd) pre-folded
    wk = p_ref[R_WK:R_WK + HIDDEN, 0:HIDDEN]
    wv = p_ref[R_WV:R_WV + HIDDEN, 0:HIDDEN]
    q = jnp.dot(y, wq, preferred_element_type=jnp.float32) + vec(R_BQ)
    k = jnp.dot(y, wk, preferred_element_type=jnp.float32) + vec(R_BK)
    v = jnp.dot(y, wv, preferred_element_type=jnp.float32) + vec(R_BV)

    mask = p_ref[R_MASK:R_MASK + NUM_HEADS * SEQ, 0:HIDDEN]   # (NH*SEQ, HIDDEN) 0/1

    q3 = q.reshape(bb, SEQ, HIDDEN)                           # tile-preserving reshapes
    k3 = k.reshape(bb, SEQ, HIDDEN)
    v3 = v.reshape(bb, SEQ, HIDDEN)

    # Replicate Q per head (sublane-block tile) and keep only head h's columns in
    # row-block h.  K/V stay token-major; contraction over the full HIDDEN axis then
    # yields exactly the per-head scores (masked lanes contribute zero).
    qr = jnp.tile(q3, (1, NUM_HEADS, 1)) * mask[None]         # (bb, NH*SEQ, HIDDEN)

    s = jnp.einsum('bqc,bkc->bqk', qr, k3,
                   preferred_element_type=jnp.float32)        # (bb, NH*SEQ, SEQ)
    s = s - jnp.max(s, axis=-1, keepdims=True)
    p = jnp.exp(s)
    p = p / jnp.sum(p, axis=-1, keepdims=True)                # all SEQ entries valid
    o = jnp.einsum('bqk,bkc->bqc', p, v3,
                   preferred_element_type=jnp.float32)        # (bb, NH*SEQ, HIDDEN)

    # Select head h's columns from row-block h and fold back to token-major rows.
    # NUM_HEADS-1 adds of sublane-aligned blocks — head-count bounded, not batch.
    o = o * mask[None]
    attn = o[:, 0:SEQ, :]
    for h in range(1, NUM_HEADS):
        attn = attn + o[:, h * SEQ:(h + 1) * SEQ, :]
    attn = attn.reshape(bb * SEQ, HIDDEN)

    wp = p_ref[R_WP:R_WP + HIDDEN, 0:HIDDEN]
    attn = jnp.dot(attn, wp, preferred_element_type=jnp.float32) + vec(R_BP)
    x = x + attn                                              # residual 1

    # ---------------- MLP branch ----------------
    y = _layernorm(x, vec(R_G2), vec(R_B2))
    w1 = p_ref[R_W1:R_W1 + HIDDEN, 0:MLP_DIM]
    w2 = p_ref[R_W2:R_W2 + MLP_DIM, 0:HIDDEN]
    h1 = jnp.dot(y, w1, preferred_element_type=jnp.float32) + vec(R_BF1, MLP_DIM)
    h1 = _gelu_exact(h1)
    h2 = jnp.dot(h1, w2, preferred_element_type=jnp.float32) + vec(R_BF2)

    out_ref[...] = (x + h2).astype(out_ref.dtype)             # residual 2


def pack_params(params):
    """Pack all parameters + head mask into one (P_ROWS, P_COLS) slab.  Done ONCE.

    Also folds the attention 1/sqrt(head_dim) scale into the Q weight/bias.
    """
    (g1, be1, wqkv, bqkv, wproj, bproj, g2, be2, w1, bm1, w2, bm2) = params
    scale = HEAD_DIM ** -0.5

    wq = wqkv[:, :HIDDEN] * scale
    wk = wqkv[:, HIDDEN:2 * HIDDEN]
    wv = wqkv[:, 2 * HIDDEN:]
    bq = bqkv[:, :HIDDEN] * scale
    bk = bqkv[:, HIDDEN:2 * HIDDEN]
    bv = bqkv[:, 2 * HIDDEN:]

    col_head = jnp.arange(HIDDEN) // HEAD_DIM                       # (HIDDEN,)
    row_head = jnp.repeat(jnp.arange(NUM_HEADS), SEQ)               # (NH*SEQ,)
    mask = (row_head[:, None] == col_head[None, :]).astype(jnp.float32)

    slab = jnp.zeros((P_ROWS, P_COLS), jnp.float32)
    slab = slab.at[R_WQ:R_WQ + HIDDEN, 0:HIDDEN].set(wq)
    slab = slab.at[R_WK:R_WK + HIDDEN, 0:HIDDEN].set(wk)
    slab = slab.at[R_WV:R_WV + HIDDEN, 0:HIDDEN].set(wv)
    slab = slab.at[R_WP:R_WP + HIDDEN, 0:HIDDEN].set(wproj)
    slab = slab.at[R_W1:R_W1 + HIDDEN, 0:MLP_DIM].set(w1)
    slab = slab.at[R_W2:R_W2 + MLP_DIM, 0:HIDDEN].set(w2)
    slab = slab.at[R_G1:R_G1 + 1, 0:HIDDEN].set(g1)
    slab = slab.at[R_B1:R_B1 + 1, 0:HIDDEN].set(be1)
    slab = slab.at[R_BQ:R_BQ + 1, 0:HIDDEN].set(bq)
    slab = slab.at[R_BK:R_BK + 1, 0:HIDDEN].set(bk)
    slab = slab.at[R_BV:R_BV + 1, 0:HIDDEN].set(bv)
    slab = slab.at[R_BP:R_BP + 1, 0:HIDDEN].set(bproj)
    slab = slab.at[R_G2:R_G2 + 1, 0:HIDDEN].set(g2)
    slab = slab.at[R_B2:R_B2 + 1, 0:HIDDEN].set(be2)
    slab = slab.at[R_BF1:R_BF1 + 1, 0:MLP_DIM].set(bm1)
    slab = slab.at[R_BF2:R_BF2 + 1, 0:HIDDEN].set(bm2)
    slab = slab.at[R_MASK:R_MASK + NUM_HEADS * SEQ, 0:HIDDEN].set(mask)
    return slab


def transformer_block(x, param_slab, *, batch_block=None):
    B, S, H = x.shape
    assert S == SEQ and H == HIDDEN
    # Default: the whole batch in ONE grid step (at this size the fixed per-step /
    # per-core DMA overhead outweighs a v7x megacore split).  batch_block is kept for
    # experimentation on larger batches; the grid axis is "parallel" (independent rows).
    bb = B if batch_block is None else batch_block
    assert B % bb == 0
    rows = bb * S

    x2d = x.reshape(B * S, H)                  # fold batch onto sublanes (free reshape)

    row_spec = pl.BlockSpec((rows, H), lambda i: (i, 0))
    out2d = pl.pallas_call(
        functools.partial(transformer_block_kernel, bb=bb),
        out_shape=jax.ShapeDtypeStruct((B * S, H), x.dtype),
        grid=(B // bb,),
        in_specs=[row_spec,
                  pl.BlockSpec((P_ROWS, P_COLS), lambda i: (0, 0))],
        out_specs=row_spec,
        compiler_params=pltpu.CompilerParams(dimension_semantics=("parallel",)),
    )(x2d, param_slab)
    return out2d.reshape(B, S, H)


def init_params(key):
    ks = jax.random.split(key, 4)
    std = 0.02
    # Linear weights stored pre-transposed: (in_features, out_features)
    w_qkv = jax.random.normal(ks[0], (HIDDEN, 3 * HIDDEN), jnp.float32) * std
    b_qkv = jnp.zeros((1, 3 * HIDDEN), jnp.float32)
    w_proj = jax.random.normal(ks[1], (HIDDEN, HIDDEN), jnp.float32) * std
    b_proj = jnp.zeros((1, HIDDEN), jnp.float32)
    w_fc1 = jax.random.normal(ks[2], (HIDDEN, MLP_DIM), jnp.float32) * std
    b_fc1 = jnp.zeros((1, MLP_DIM), jnp.float32)
    w_fc2 = jax.random.normal(ks[3], (MLP_DIM, HIDDEN), jnp.float32) * std
    b_fc2 = jnp.zeros((1, HIDDEN), jnp.float32)
    gamma1 = jnp.ones((1, HIDDEN), jnp.float32)
    beta1 = jnp.zeros((1, HIDDEN), jnp.float32)
    gamma2 = jnp.ones((1, HIDDEN), jnp.float32)
    beta2 = jnp.zeros((1, HIDDEN), jnp.float32)
    return [gamma1, beta1, w_qkv, b_qkv, w_proj, b_proj,
            gamma2, beta2, w_fc1, b_fc1, w_fc2, b_fc2]


def reference(x, params):
    (g1, be1, wqkv, bqkv, wproj, bproj, g2, be2, w1, bm1, w2, bm2) = params

    def ln(x, g, b):
        m = jnp.mean(x, axis=-1, keepdims=True)
        v = jnp.mean((x - m) ** 2, axis=-1, keepdims=True)
        return (x - m) / jnp.sqrt(v + EPS) * g[0] + b[0]

    y = ln(x, g1, be1)
    qkv = y @ wqkv + bqkv[0]                                       # (B, S, 3H)
    B, S, _ = x.shape
    qkv = qkv.reshape(B, S, 3, NUM_HEADS, HEAD_DIM).transpose(2, 0, 3, 1, 4)
    q, k, v = qkv[0], qkv[1], qkv[2]                               # (B, nh, S, hd)
    attn = jnp.einsum("bhqd,bhkd->bhqk", q, k) * (HEAD_DIM ** -0.5)
    attn = jax.nn.softmax(attn, axis=-1)
    o = jnp.einsum("bhqk,bhkd->bhqd", attn, v).transpose(0, 2, 1, 3).reshape(B, S, HIDDEN)
    o = o @ wproj + bproj[0]
    x = x + o
    y = ln(x, g2, be2)
    h = jax.nn.gelu(y @ w1 + bm1[0], approximate=False)
    h = h @ w2 + bm2[0]
    return x + h


if __name__ == "__main__":
    key = jax.random.PRNGKey(0)
    kx, kp = jax.random.split(key)
    x = jax.random.normal(kx, (BATCH, SEQ, HIDDEN), jnp.float32)
    params = init_params(kp)

    param_slab = pack_params(params)           # once, outside the per-call path
    param_slab = jax.block_until_ready(param_slab)

    out = transformer_block(x, param_slab)
    out = jax.block_until_ready(out)

    ref = reference(x, params)
    assert out.shape == (BATCH, SEQ, HIDDEN)
    max_err = float(jnp.max(jnp.abs(out - ref)))
    assert jnp.allclose(out, ref, atol=1e-4, rtol=1e-4), max_err

    print("KERNEL_OK")
</pallas_src>

<mosaic_0001>
module attributes {stable_mosaic.version = 11 : i64} {
  func.func @transformer_block_kernel(%arg0: i32, %arg1: memref<16x32xf32, #tpu.memory_space<vmem>>, %arg2: memref<272x64xf32, #tpu.memory_space<vmem>>, %arg3: memref<16x32xf32, #tpu.memory_space<vmem>>) attributes {dimension_semantics = [#tpu.dimension_semantics<parallel>], iteration_bounds = array<i64: 1>, scalar_prefetch = 0 : i64, scratch_operands = 0 : i64, tpu.core_type = #tpu.core_type<tc>, window_params = [{transform_indices = @transform_0, window_bounds = array<i64: 16, 32>}, {pipeline_mode = #tpu.pipeline_mode<synchronous>, transform_indices = @transform_1, window_bounds = array<i64: 272, 64>}, {transform_indices = @transform_2, window_bounds = array<i64: 16, 32>}]} {
    %c0 = arith.constant 0 : index
    %c0_0 = arith.constant 0 : index
    %0 = vector.load %arg1[%c0, %c0_0] : memref<16x32xf32, #tpu.memory_space<vmem>>, vector<16x32xf32>
    %c224 = arith.constant 224 : index
    %c0_1 = arith.constant 0 : index
    %1 = vector.load %arg2[%c224, %c0_1] : memref<272x64xf32, #tpu.memory_space<vmem>>, vector<1x32xf32>
    %c225 = arith.constant 225 : index
    %c0_2 = arith.constant 0 : index
    %2 = vector.load %arg2[%c225, %c0_2] : memref<272x64xf32, #tpu.memory_space<vmem>>, vector<1x32xf32>
    %cst = arith.constant dense<0.000000e+00> : vector<16xf32>
    %3 = vector.multi_reduction <add>, %0, %cst [1] : vector<16x32xf32> to vector<16xf32>
    %4 = vector.shape_cast %3 : vector<16xf32> to vector<16x1xf32>
    %cst_3 = arith.constant 3.200000e+01 : f32
    %5 = vector.broadcast %cst_3 : f32 to vector<16x1xf32>
    %6 = arith.divf %4, %5 : vector<16x1xf32>
    %7 = arith.mulf %0, %0 : vector<16x32xf32>
    %cst_4 = arith.constant dense<0.000000e+00> : vector<16xf32>
    %8 = vector.multi_reduction <add>, %7, %cst_4 [1] : vector<16x32xf32> to vector<16xf32>
    %9 = vector.shape_cast %8 : vector<16xf32> to vector<16x1xf32>
    %cst_5 = arith.constant 3.200000e+01 : f32
    %10 = vector.broadcast %cst_5 : f32 to vector<16x1xf32>
    %11 = arith.divf %9, %10 : vector<16x1xf32>
    %12 = arith.mulf %6, %6 : vector<16x1xf32>
    %13 = arith.subf %11, %12 : vector<16x1xf32>
    %14 = vector.broadcast %6 : vector<16x1xf32> to vector<16x32xf32>
    %15 = arith.subf %0, %14 : vector<16x32xf32>
    %cst_6 = arith.constant 9.99999974E-6 : f32
    %16 = vector.broadcast %cst_6 : f32 to vector<16x1xf32>
    %17 = arith.addf %13, %16 : vector<16x1xf32>
    %18 = math.rsqrt %17 : vector<16x1xf32>
    %19 = vector.broadcast %18 : vector<16x1xf32> to vector<16x32xf32>
    %20 = arith.mulf %15, %19 : vector<16x32xf32>
    %21 = vector.broadcast %1 : vector<1x32xf32> to vector<16x32xf32>
    %22 = arith.mulf %20, %21 : vector<16x32xf32>
    %23 = vector.broadcast %2 : vector<1x32xf32> to vector<16x32xf32>
    %24 = arith.addf %22, %23 : vector<16x32xf32>
    %c0_7 = arith.constant 0 : index
    %c0_8 = arith.constant 0 : index
    %25 = vector.load %arg2[%c0_7, %c0_8] : memref<272x64xf32, #tpu.memory_space<vmem>>, vector<32x32xf32>
    %c32 = arith.constant 32 : index
    %c0_9 = arith.constant 0 : index
    %26 = vector.load %arg2[%c32, %c0_9] : memref<272x64xf32, #tpu.memory_space<vmem>>, vector<32x32xf32>
    %c64 = arith.constant 64 : index
    %c0_10 = arith.constant 0 : index
    %27 = vector.load %arg2[%c64, %c0_10] : memref<272x64xf32, #tpu.memory_space<vmem>>, vector<32x32xf32>
    %cst_11 = arith.constant dense<0.000000e+00> : vector<16x32xf32>
    %28 = tpu.matmul %24, %25, %cst_11 {dimension_numbers = #tpu.dot_dimension_numbers<[1], [0], [0], [1], [0, 0, 1, 1], [], []>} : vector<16x32xf32>, vector<32x32xf32>, vector<16x32xf32> -> vector<16x32xf32>
    %c226 = arith.constant 226 : index
    %c0_12 = arith.constant 0 : index
    %29 = vector.load %arg2[%c226, %c0_12] : memref<272x64xf32, #tpu.memory_space<vmem>>, vector<1x32xf32>
    %30 = vector.broadcast %29 : vector<1x32xf32> to vector<16x32xf32>
    %31 = arith.addf %28, %30 : vector<16x32xf32>
    %cst_13 = arith.constant dense<0.000000e+00> : vector<16x32xf32>
    %32 = tpu.matmul %24, %26, %cst_13 {dimension_numbers = #tpu.dot_dimension_numbers<[1], [0], [0], [1], [0, 0, 1, 1], [], []>} : vector<16x32xf32>, vector<32x32xf32>, vector<16x32xf32> -> vector<16x32xf32>
    %c227 = arith.constant 227 : index
    %c0_14 = arith.constant 0 : index
    %33 = vector.load %arg2[%c227, %c0_14] : memref<272x64xf32, #tpu.memory_space<vmem>>, vector<1x32xf32>
    %34 = vector.broadcast %33 : vector<1x32xf32> to vector<16x32xf32>
    %35 = arith.addf %32, %34 : vector<16x32xf32>
    %cst_15 = arith.constant dense<0.000000e+00> : vector<16x32xf32>
    %36 = tpu.matmul %24, %27, %cst_15 {dimension_numbers = #tpu.dot_dimension_numbers<[1], [0], [0], [1], [0, 0, 1, 1], [], []>} : vector<16x32xf32>, vector<32x32xf32>, vector<16x32xf32> -> vector<16x32xf32>
    %c228 = arith.constant 228 : index
    %c0_16 = arith.constant 0 : index
    %37 = vector.load %arg2[%c228, %c0_16] : memref<272x64xf32, #tpu.memory_space<vmem>>, vector<1x32xf32>
    %38 = vector.broadcast %37 : vector<1x32xf32> to vector<16x32xf32>
    %39 = arith.addf %36, %38 : vector<16x32xf32>
    %c240 = arith.constant 240 : index
    %c0_17 = arith.constant 0 : index
    %40 = vector.load %arg2[%c240, %c0_17] : memref<272x64xf32, #tpu.memory_space<vmem>>, vector<32x32xf32>
    %41 = vector.shape_cast %31 : vector<16x32xf32> to vector<2x8x32xf32>
    %42 = vector.shape_cast %35 : vector<16x32xf32> to vector<2x8x32xf32>
    %43 = vector.shape_cast %39 : vector<16x32xf32> to vector<2x8x32xf32>
    %44 = tpu.concatenate %41, %41, %41, %41 in 1 : vector<2x8x32xf32>, vector<2x8x32xf32>, vector<2x8x32xf32>, vector<2x8x32xf32> -> vector<2x32x32xf32>
    %45 = vector.shape_cast %40 : vector<32x32xf32> to vector<1x32x32xf32>
    %46 = vector.broadcast %45 : vector<1x32x32xf32> to vector<2x32x32xf32>
    %47 = arith.mulf %44, %46 : vector<2x32x32xf32>
    "tpu.trace_start"() <{level = 10 : i32, message = "bqc,bkc->bqk"}> : () -> ()
    %cst_18 = arith.constant dense<0.000000e+00> : vector<2x32x8xf32>
    %48 = tpu.matmul %47, %42, %cst_18 {dimension_numbers = #tpu.dot_dimension_numbers<[2], [2], [1], [1], [0, 0, 0, 1, 1, 1], [0], [0]>} : vector<2x32x32xf32>, vector<2x8x32xf32>, vector<2x32x8xf32> -> vector<2x32x8xf32>
    "tpu.trace_stop"() : () -> ()
    %cst_19 = arith.constant dense<0xFF800000> : vector<2x32xf32>
    %49 = vector.multi_reduction <maximumf>, %48, %cst_19 [2] : vector<2x32x8xf32> to vector<2x32xf32>
    %50 = vector.shape_cast %49 : vector<2x32xf32> to vector<2x32x1xf32>
    %51 = vector.broadcast %50 : vector<2x32x1xf32> to vector<2x32x8xf32>
    %52 = arith.subf %48, %51 : vector<2x32x8xf32>
    %53 = math.exp %52 : vector<2x32x8xf32>
    %cst_20 = arith.constant dense<0.000000e+00> : vector<2x32xf32>
    %54 = vector.multi_reduction <add>, %53, %cst_20 [2] : vector<2x32x8xf32> to vector<2x32xf32>
    %55 = vector.shape_cast %54 : vector<2x32xf32> to vector<2x32x1xf32>
    %56 = vector.broadcast %55 : vector<2x32x1xf32> to vector<2x32x8xf32>
    %57 = arith.divf %53, %56 : vector<2x32x8xf32>
    "tpu.trace_start"() <{level = 10 : i32, message = "bqk,bkc->bqc"}> : () -> ()
    %cst_21 = arith.constant dense<0.000000e+00> : vector<2x32x32xf32>
    %58 = tpu.matmul %57, %43, %cst_21 {dimension_numbers = #tpu.dot_dimension_numbers<[2], [1], [1], [2], [0, 0, 0, 1, 1, 2], [0], [0]>} : vector<2x32x8xf32>, vector<2x8x32xf32>, vector<2x32x32xf32> -> vector<2x32x32xf32>
    "tpu.trace_stop"() : () -> ()
    %59 = vector.shape_cast %40 : vector<32x32xf32> to vector<1x32x32xf32>
    %60 = vector.broadcast %59 : vector<1x32x32xf32> to vector<2x32x32xf32>
    %61 = arith.mulf %58, %60 : vector<2x32x32xf32>
    %62 = vector.extract_strided_slice %61 {offsets = [0, 0, 0], sizes = [2, 8, 32], strides = [1, 1, 1]} : vector<2x32x32xf32> to vector<2x8x32xf32>
    %63 = vector.extract_strided_slice %61 {offsets = [0, 8, 0], sizes = [2, 8, 32], strides = [1, 1, 1]} : vector<2x32x32xf32> to vector<2x8x32xf32>
    %64 = arith.addf %62, %63 : vector<2x8x32xf32>
    %65 = vector.extract_strided_slice %61 {offsets = [0, 16, 0], sizes = [2, 8, 32], strides = [1, 1, 1]} : vector<2x32x32xf32> to vector<2x8x32xf32>
    %66 = arith.addf %64, %65 : vector<2x8x32xf32>
    %67 = vector.extract_strided_slice %61 {offsets = [0, 24, 0], sizes = [2, 8, 32], strides = [1, 1, 1]} : vector<2x32x32xf32> to vector<2x8x32xf32>
    %68 = arith.addf %66, %67 : vector<2x8x32xf32>
    %69 = vector.shape_cast %68 : vector<2x8x32xf32> to vector<16x32xf32>
    %c96 = arith.constant 96 : index
    %c0_22 = arith.constant 0 : index
    %70 = vector.load %arg2[%c96, %c0_22] : memref<272x64xf32, #tpu.memory_space<vmem>>, vector<32x32xf32>
    %cst_23 = arith.constant dense<0.000000e+00> : vector<16x32xf32>
    %71 = tpu.matmul %69, %70, %cst_23 {dimension_numbers = #tpu.dot_dimension_numbers<[1], [0], [0], [1], [0, 0, 1, 1], [], []>} : vector<16x32xf32>, vector<32x32xf32>, vector<16x32xf32> -> vector<16x32xf32>
    %c229 = arith.constant 229 : index
    %c0_24 = arith.constant 0 : index
    %72 = vector.load %arg2[%c229, %c0_24] : memref<272x64xf32, #tpu.memory_space<vmem>>, vector<1x32xf32>
    %73 = vector.broadcast %72 : vector<1x32xf32> to vector<16x32xf32>
    %74 = arith.addf %71, %73 : vector<16x32xf32>
    %75 = arith.addf %0, %74 : vector<16x32xf32>
    %c230 = arith.constant 230 : index
    %c0_25 = arith.constant 0 : index
    %76 = vector.load %arg2[%c230, %c0_25] : memref<272x64xf32, #tpu.memory_space<vmem>>, vector<1x32xf32>
    %c231 = arith.constant 231 : index
    %c0_26 = arith.constant 0 : index
    %77 = vector.load %arg2[%c231, %c0_26] : memref<272x64xf32, #tpu.memory_space<vmem>>, vector<1x32xf32>
    %cst_27 = arith.constant dense<0.000000e+00> : vector<16xf32>
    %78 = vector.multi_reduction <add>, %75, %cst_27 [1] : vector<16x32xf32> to vector<16xf32>
    %79 = vector.shape_cast %78 : vector<16xf32> to vector<16x1xf32>
    %cst_28 = arith.constant 3.200000e+01 : f32
    %80 = vector.broadcast %cst_28 : f32 to vector<16x1xf32>
    %81 = arith.divf %79, %80 : vector<16x1xf32>
    %82 = arith.mulf %75, %75 : vector<16x32xf32>
    %cst_29 = arith.constant dense<0.000000e+00> : vector<16xf32>
    %83 = vector.multi_reduction <add>, %82, %cst_29 [1] : vector<16x32xf32> to vector<16xf32>
    %84 = vector.shape_cast %83 : vector<16xf32> to vector<16x1xf32>
    %cst_30 = arith.constant 3.200000e+01 : f32
    %85 = vector.broadcast %cst_30 : f32 to vector<16x1xf32>
    %86 = arith.divf %84, %85 : vector<16x1xf32>
    %87 = arith.mulf %81, %81 : vector<16x1xf32>
    %88 = arith.subf %86, %87 : vector<16x1xf32>
    %89 = vector.broadcast %81 : vector<16x1xf32> to vector<16x32xf32>
    %90 = arith.subf %75, %89 : vector<16x32xf32>
    %cst_31 = arith.constant 9.99999974E-6 : f32
    %91 = vector.broadcast %cst_31 : f32 to vector<16x1xf32>
    %92 = arith.addf %88, %91 : vector<16x1xf32>
    %93 = math.rsqrt %92 : vector<16x1xf32>
    %94 = vector.broadcast %93 : vector<16x1xf32> to vector<16x32xf32>
    %95 = arith.mulf %90, %94 : vector<16x32xf32>
    %96 = vector.broadcast %76 : vector<1x32xf32> to vector<16x32xf32>
    %97 = arith.mulf %95, %96 : vector<16x32xf32>
    %98 = vector.broadcast %77 : vector<1x32xf32> to vector<16x32xf32>
    %99 = arith.addf %97, %98 : vector<16x32xf32>
    %c128 = arith.constant 128 : index
    %c0_32 = arith.constant 0 : index
    %100 = vector.load %arg2[%c128, %c0_32] : memref<272x64xf32, #tpu.memory_space<vmem>>, vector<32x64xf32>
    %c160 = arith.constant 160 : index
    %c0_33 = arith.constant 0 : index
    %101 = vector.load %arg2[%c160, %c0_33] : memref<272x64xf32, #tpu.memory_space<vmem>>, vector<64x32xf32>
    %cst_34 = arith.constant dense<0.000000e+00> : vector<16x64xf32>
    %102 = tpu.matmul %99, %100, %cst_34 {dimension_numbers = #tpu.dot_dimension_numbers<[1], [0], [0], [1], [0, 0, 1, 1], [], []>} : vector<16x32xf32>, vector<32x64xf32>, vector<16x64xf32> -> vector<16x64xf32>
    %c232 = arith.constant 232 : index
    %c0_35 = arith.constant 0 : index
    %103 = vector.load %arg2[%c232, %c0_35] : memref<272x64xf32, #tpu.memory_space<vmem>>, vector<1x64xf32>
    %104 = vector.broadcast %103 : vector<1x64xf32> to vector<16x64xf32>
    %105 = arith.addf %102, %104 : vector<16x64xf32>
    %cst_36 = arith.constant 5.000000e-01 : f32
    %106 = vector.broadcast %cst_36 : f32 to vector<16x64xf32>
    %107 = arith.mulf %106, %105 : vector<16x64xf32>
    %cst_37 = arith.constant 0.707106769 : f32
    %108 = vector.broadcast %cst_37 : f32 to vector<16x64xf32>
    %109 = arith.mulf %105, %108 : vector<16x64xf32>
    %110 = math.erf %109 : vector<16x64xf32>
    %cst_38 = arith.constant 1.000000e+00 : f32
    %111 = vector.broadcast %cst_38 : f32 to vector<16x64xf32>
    %112 = arith.addf %111, %110 : vector<16x64xf32>
    %113 = arith.mulf %107, %112 : vector<16x64xf32>
    %cst_39 = arith.constant dense<0.000000e+00> : vector<16x32xf32>
    %114 = tpu.matmul %113, %101, %cst_39 {dimension_numbers = #tpu.dot_dimension_numbers<[1], [0], [0], [1], [0, 0, 1, 1], [], []>} : vector<16x64xf32>, vector<64x32xf32>, vector<16x32xf32> -> vector<16x32xf32>
    %c233 = arith.constant 233 : index
    %c0_40 = arith.constant 0 : index
    %115 = vector.load %arg2[%c233, %c0_40] : memref<272x64xf32, #tpu.memory_space<vmem>>, vector<1x32xf32>
    %116 = vector.broadcast %115 : vector<1x32xf32> to vector<16x32xf32>
    %117 = arith.addf %114, %116 : vector<16x32xf32>
    %118 = arith.addf %75, %117 : vector<16x32xf32>
    %c0_41 = arith.constant 0 : index
    %c0_42 = arith.constant 0 : index
    %119 = vector.load %arg3[%c0_41, %c0_42] : memref<16x32xf32, #tpu.memory_space<vmem>>, vector<16x32xf32>
    tpu.vector_store %arg3[%c0_41, %c0_42], %118 {strides = array<i32>} : memref<16x32xf32, #tpu.memory_space<vmem>>, vector<16x32xf32>,
    return
  }
  func.func @transform_0(%arg0: i32) -> (i32, i32) {
    %c0_i32 = arith.constant 0 : i32
    %c0_i32_0 = arith.constant 0 : i32
    return %arg0, %c0_i32 : i32, i32
  }
  func.func @transform_1(%arg0: i32) -> (i32, i32) {
    %c0_i32 = arith.constant 0 : i32
    %c0_i32_0 = arith.constant 0 : i32
    %c0_i32_1 = arith.constant 0 : i32
    return %c0_i32, %c0_i32_0 : i32, i32
  }
  func.func @transform_2(%arg0: i32) -> (i32, i32) {
    %c0_i32 = arith.constant 0 : i32
    %c0_i32_0 = arith.constant 0 : i32
    return %arg0, %c0_i32 : i32, i32
  }
}

</mosaic_0001>

<bundles_post_ra>
// kernel: tpu_custom_call.1
= control target key start
LH: loop header
LB: loop body
LE: loop exit
PB: predicated region body
PF: predicated region fallthrough
CT: control target
= control target key end

     0   :  { %vm16_vm0 = vcmask 261120   ;;  %s1718_s0 = inlined_call_operand.vmem [shape: f32[16,32], index: 0, kind: input, shape index: {}]   ;;  %s1719_s1 = inlined_call_operand.vmem [shape: f32[272,64], index: 1, kind: input, shape index: {}]   ;;  %s1720_s2 = inlined_call_operand.hbm [shape: f32[16,32], index: 2, kind: output, shape index: {}]  }
   0x1   :  { %v1476_v0 = vld [vmem:[%s1718_s0] sm:$0xff]  ;;  %v1481_v1 = vld [vmem:[%s1718_s0 + $0x8] sm:$0xff] }
   0x2   :  { %7 = vsyncpa [#allocation3], 0  ;;  %v17_v2 = vsel %vm16_vm0, %v1476_v0, 0.0  ;;  %v26_v3 = vmul.f32 %v1476_v0, %v1476_v0  ;;  %v27_v4 = vmul.f32 %v1481_v1, %v1481_v1  ;;  %v20_v6 = vsel %vm16_vm0, %v1481_v1, 0.0  ;;  %v63_v8 = vld [vmem:[%s1719_s1 + $0x18] sm:$0xff]  ;;  %v62_v10 = vld [vmem:[%s1719_s1 + $0x10] sm:$0xff] }
   0x3   :  { %18 = vadd.xlane.f32.xlu0 %v17_v2  ;;  %v67_v9 = vld [vmem:[%s1719_s1 + $0x38] sm:$0xff]  ;;  %1278 = vmatprep.subr.mxu0 %v63_v8  ;;  %v66_v11 = vld [vmem:[%s1719_s1 + $0x30] sm:$0xff]  ;;  %v61_v12 = vld [vmem:[%s1719_s1 + $0x8] sm:$0xff]  ;;  %vm530_vm1 = vcmask 64512   ;;  %vm1076_vm2 = vcmask 523264   ;;  %s1455_s10 = smov [#allocation2]  }
   0x4   :  { %v28_v5 = vsel %vm16_vm0, %v26_v3, 0.0  ;;  %v31_v7 = vsel %vm16_vm0, %v27_v4, 0.0  ;;  %1289 = vmatprep.subr.mxu1 %v67_v9  ;;  %1279 = vmatpush3.msra.mxu0 %v63_v8  ;;  %v65_v13 = vld [vmem:[%s1719_s1 + $0x28] sm:$0xff]  ;;  %v60_v14 = vld [vmem:[%s1719_s1] sm:$0xff]  ;;  %v71_v16 = vld [vmem:[%s1719_s1 + $0x58] sm:$0xff]  ;;  %s1167_s11 = sshll.u32 %s1455_s10, 4  ;;  %s1168_s11 = int_to_ptr.vmem [resolvable:$true] %s1167_s11 }
   0x5   :  { %29 = vadd.xlane.f32.xlu1 %v28_v5  ;;  %1290 = vmatpush3.msra.mxu1 %v67_v9  ;;  %v64_v15 = vld [vmem:[%s1719_s1 + $0x20] sm:$0xff]  ;;  %v70_v43 = vld [vmem:[%s1719_s1 + $0x50] sm:$0xff]  ;;  %v69_v44 = vld [vmem:[%s1719_s1 + $0x48] sm:$0xff]  ;;  %s1433_s12 = scalar_lea.vmem %s1168_s11, 256  ;;  %p1438_p1 = scmp.lt.s32.totalorder %s1168_s11, %s1168_s11 }
   0x6   :  { %1280 = vmatprep.subr.mxu0 %v62_v10  ;;  %1291 = vmatprep.subr.mxu1 %v66_v11  ;;  %v1178_v33 = vld [vmem:[%s1719_s1 + $0xe0] ss:$0 sm:$0xff]  ;;  %v1179_v35 = vld [vmem:[%s1719_s1 + $0xe1] ss:$0 sm:$0xff]  ;;  %v1180_v48 = vld [vmem:[%s1719_s1 + $0xe2] ss:$0 sm:$0xff]  ;;  %p1434_p0 = scmp.ne.s32.totalorder %s1168_s11, %s1433_s12  ;;  %p1439_p2 = scmp.lt.s32.totalorder %s1433_s12, %s1433_s12 }
   0x7   :  { %21 = vadd.xlane.f32.xlu0 %v20_v6  ;;  %1281 = vmatpush3.msra.mxu0 %v62_v10  ;;  %v68_v45 = vld [vmem:[%s1719_s1 + $0x40] sm:$0xff]  ;;  %v1552_v55 = vld [vmem:[%s1719_s1 + $0xf0] sm:$0xff]  ;;  %v1565_v59 = vld [vmem:[%s1719_s1 + $0xf8] sm:$0xff] }
   0x8   :  { %1292 = vmatpush3.msra.mxu1 %v66_v11  ;;  %1282 = vmatprep.subr.mxu0 %v61_v12  ;;  %v1183_v49 = vld [vmem:[%s1719_s1 + $0xe3] ss:$0 sm:$0xff]  ;;  %v1570_v60 = vld [vmem:[%s1719_s1 + $0x108] sm:$0xff]  ;;  %v1186_v61 = vld [vmem:[%s1719_s1 + $0xe4] ss:$0 sm:$0xff]  ;;  %p1440_p3 = por %p1439_p2, %p1438_p1 }
   0x9   :  { %32 = vadd.xlane.f32.xlu1 %v31_v7  ;;  %1283 = vmatpush3.msra.mxu0 %v61_v12  ;;  %v1560_v58 = vld [vmem:[%s1719_s1 + $0x100] sm:$0xff] }
   0xa   :  { %1293 = vmatprep.subr.mxu1 %v65_v13  ;;  %1284 = vmatprep.subr.mxu0 %v60_v14  ;;  %p1441_p4 = pnand %p1440_p3, %p1434_p0 }
   0xb   :  { %1294 = vmatpush3.msra.mxu1 %v65_v13  ;;  %1285 = vmatpush3.msra.mxu0 %v60_v14 }
   0xc   :  { %1295 = vmatprep.subr.mxu1 %v64_v15  ;;  %1300 = vmatprep.subr.mxu0 %v71_v16 }
   0xd   :  { %1296 = vmatpush3.msra.mxu1 %v64_v15 }
  0x8c   :  { %v19_v17 = vpop.xlane.xlu0 %18 }
  0x8d   :  { %v24_v18 = vmul.f32 0.03125, %v19_v17 }
  0x8e   :  { %v30_v19 = vpop.xlane.xlu1 %29 }
  0x8f   :  { %v36_v20 = vmul.f32 %v24_v18, %v24_v18  ;;  %v34_v21 = vmul.f32 0.03125, %v30_v19  ;;  %v40_v31 = vsub.f32 %v1476_v0, %v24_v18 }
  0x90   :  { %v22_v22 = vpop.xlane.xlu0 %21 }
  0x91   :  { %v38_v23 = vsub.f32 %v34_v21, %v36_v20  ;;  %v25_v24 = vmul.f32 0.03125, %v22_v22 }
  0x92   :  { %v33_v25 = vpop.xlane.xlu1 %32 }
  0x93   :  { %v42_v26 = vadd.f32 1e-05, %v38_v23  ;;  %v37_v27 = vmul.f32 %v25_v24, %v25_v24  ;;  %v35_v28 = vmul.f32 0.03125, %v33_v25  ;;  %v41_v36 = vsub.f32 %v1481_v1, %v25_v24 }
  0x95   :  { %1389 = vrsqrt.f32 %v42_v26  ;;  %v39_v29 = vsub.f32 %v35_v28, %v37_v27 }
  0x97   :  { %v43_v30 = vadd.f32 1e-05, %v39_v29 }
  0x99   :  { %1391 = vrsqrt.f32 %v43_v30 }
  0xa2   :  { %v1390_v32 = vpop.eup %1389 }
  0xa3   :  { %v46_v34 = vmul.f32 %v1390_v32, %v40_v31 }
  0xa5   :  { %v52_v37 = vmul.f32 %v1178_v33, %v46_v34 }
  0xa6   :  { %v1392_v38 = vpop.eup %1391 }
  0xa7   :  { %v47_v39 = vmul.f32 %v1392_v38, %v41_v36  ;;  %v58_v40 = vadd.f32 %v1179_v35, %v52_v37 }
  0xa9   :  { %v53_v41 = vmul.f32 %v1178_v33, %v47_v39  ;;  %1286 = vmatprep.mubr.msk.f32.mxu0 %vm16_vm0, %v58_v40  ;;  %1297 = vmatprep.mubr.msk.f32.mxu1 %vm16_vm0, %v58_v40 }
  0xab   :  { %v59_v42 = vadd.f32 %v1179_v35, %v53_v41 }
  0xad   :  { %1287 = vmatmul.mubr.msk.f32.vlgmr.msra.gmra.mxu0 %vm16_vm0, %v59_v42  ;;  %1298 = vmatmul.mubr.msk.f32.vlgmr.msra.gmra.mxu1 %vm16_vm0, %v59_v42 }
  0xae   :  { %1301 = vmatpush3.msra.mxu0 %v71_v16  ;;  %1308 = vmatprep.mubr.msk.f32.mxu0 %vm16_vm0, %v58_v40 }
  0xaf   :  { %1302 = vmatprep.subr.mxu0 %v70_v43 }
  0xb0   :  { %1303 = vmatpush3.msra.mxu0 %v70_v43 }
  0xb1   :  { %1304 = vmatprep.subr.mxu0 %v69_v44 }
  0xb2   :  { %1305 = vmatpush3.msra.mxu0 %v69_v44 }
  0xb3   :  { %1306 = vmatprep.subr.mxu0 %v68_v45 }
  0xb4   :  { %1307 = vmatpush3.msra.mxu0 %v68_v45 }
  0xb5   :  { %1309 = vmatmul.mubr.msk.f32.vlgmr.msra.gmra.mxu0 %vm16_vm0, %v59_v42 }
 0x16d   :  { %v1288_v46 = vpop.f32.mrf.mxu0  ;;  %v1299_v47 = vpop.f32.mrf.mxu1 }
 0x16e   :  { %v155_v54 = vadd.f32 %v1288_v46, %v1180_v48  ;;  %v235_v56 = vadd.f32 %v1299_v47, %v1183_v49 }
 0x16f   :  { %v149_v50 = vpop.f32.mrf.mxu0  ;;  %v229_v51 = vpop.f32.mrf.mxu1 }
 0x170   :  { %v150_v52 = vadd.f32 %v1180_v48, %v149_v50  ;;  %v230_v53 = vadd.f32 %v1183_v49, %v229_v51  ;;  %v326_v4 = vmul.f32 %v1552_v55, %v155_v54  ;;  %v327_v7 = vmul.f32 %v1565_v59, %v155_v54 }
 0x171   :  { %v328_v9 = vmul.f32 %v1560_v58, %v155_v54  ;;  %v329_v10 = vmul.f32 %v1570_v60, %v155_v54 }
 0x172   :  { %1311 = vmatprep.subr.msk.mxu0 %vm16_vm0, %v230_v53  ;;  %1384 = vmatprep.subr.msk.mxu1 %vm16_vm0, %v230_v53  ;;  %v322_v57 = vmul.f32 %v1552_v55, %v150_v52  ;;  %v324_v62 = vmul.f32 %v1560_v58, %v150_v52  ;;  %v323_v63 = vmul.f32 %v1565_v59, %v150_v52 }
 0x173   :  { %1312 = vmatpush3.xpose.msk.msra.mxu0 %vm16_vm0, %v230_v53  ;;  %1385 = vmatpush3.xpose.msk.msra.mxu1 %vm16_vm0, %v230_v53  ;;  %v325_v2 = vmul.f32 %v1570_v60, %v150_v52 }
 0x174   :  { %1313 = vmatprep.mubr.msk.f32.mxu0 %vm16_vm0, %v322_v57  ;;  %1319 = vmatprep.subr.msk.mxu0 %vm16_vm0, %v235_v56 }
 0x175   :  { %v1310_v3 = vpop.f32.mrf.mxu0  ;;  %1316 = vmatprep.mubr.msk.f32.mxu1 %vm16_vm0, %v324_v62 }
 0x176   :  { %v315_v5 = vadd.f32 %v1310_v3, %v1186_v61  ;;  %1314 = vmatmul.mubr.msk.f32.vlgmr.msra.gmra.mxu0 %vm16_vm0, %v323_v63  ;;  %1317 = vmatmul.mubr.msk.f32.vlgmr.msra.gmra.mxu1 %vm16_vm0, %v325_v2 }
 0x177   :  { %v309_v6 = vpop.f32.mrf.mxu0  ;;  %1320 = vmatpush3.xpose.msk.msra.mxu0 %vm16_vm0, %v235_v56  ;;  %1321 = vmatprep.mubr.msk.f32.mxu0 %vm16_vm0, %v326_v4 }
 0x178   :  { %v310_v8 = vadd.f32 %v1186_v61, %v309_v6  ;;  %1335 = vmatprep.subr.mxu0 %v315_v5 }
 0x17a   :  { %1327 = vmatprep.subr.mxu1 %v310_v8  ;;  %1322 = vmatmul.mubr.msk.f32.vlgmr.msra.gmra.mxu0 %vm16_vm0, %v327_v7 }
 0x17b   :  { %1328 = vmatpush3.msra.mxu1 %v310_v8  ;;  %1324 = vmatprep.mubr.msk.f32.mxu0 %vm16_vm0, %v328_v9 }
 0x17c   :  { %1336 = vmatpush3.msra.mxu0 %v315_v5 }
 0x17e   :  { %1325 = vmatmul.mubr.msk.f32.gmra.mxu0 %vm16_vm0, %v329_v10 }
 0x236   :  { %v1315_v11 = vpop.f32.mrf.mxu0  ;;  %v1318_v12 = vpop.f32.mrf.mxu1 }
 0x237   :  { %v534_v13 = vsel %vm530_vm1, %v1315_v11, -inf  ;;  %v540_v18 = vsel %vm530_vm1, %v1318_v12, -inf }
 0x238   :  { %535 = vmax.xlane.f32.xlu1 %v534_v13  ;;  %v411_v14 = vpop.f32.mrf.mxu0  ;;  %v421_v16 = vpop.f32.mrf.mxu1 }
 0x239   :  { %v531_v15 = vsel %vm530_vm1, %v411_v14, -inf  ;;  %v537_v20 = vsel %vm530_vm1, %v421_v16, -inf }
 0x23a   :  { %532 = vmax.xlane.f32.xlu0 %v531_v15  ;;  %v1323_v17 = vpop.f32.mrf.mxu0 }
 0x23b   :  { %v546_v22 = vsel %vm530_vm1, %v1323_v17, -inf }
 0x23c   :  { %541 = vmax.xlane.f32.xlu1 %v540_v18  ;;  %v511_v19 = vpop.f32.mrf.mxu0 }
 0x23d   :  { %v543_v23 = vsel %vm530_vm1, %v511_v19, -inf }
 0x23e   :  { %538 = vmax.xlane.f32.xlu0 %v537_v20  ;;  %v1326_v21 = vpop.f32.mrf.mxu0 }
 0x23f   :  { %v552_v25 = vsel %vm530_vm1, %v1326_v21, -inf }
 0x240   :  { %547 = vmax.xlane.f32.xlu1 %v546_v22  ;;  %v521_v24 = vpop.f32.mrf.mxu0 }
 0x241   :  { %v549_v26 = vsel %vm530_vm1, %v521_v24, -inf }
 0x242   :  { %544 = vmax.xlane.f32.xlu0 %v543_v23 }
 0x244   :  { %553 = vmax.xlane.f32.xlu1 %v552_v25 }
 0x246   :  { %550 = vmax.xlane.f32.xlu0 %v549_v26 }
 0x2c1   :  { %v536_v27 = vpop.xlane.xlu1 %535 }
 0x2c2   :  { %v556_v28 = vsub.f32 %v1315_v11, %v536_v27 }
 0x2c3   :  { %v533_v29 = vpop.xlane.xlu0 %532 }
 0x2c4   :  { %v565_v30 = vmul.f32 1.442695, %v556_v28  ;;  %v555_v31 = vsub.f32 %v411_v14, %v533_v29 }
 0x2c5   :  { %v542_v32 = vpop.xlane.xlu1 %541 }
 0x2c6   :  { %1393 = vpow2.f32 %v565_v30  ;;  %v563_v33 = vmul.f32 1.442695, %v555_v31  ;;  %v558_v34 = vsub.f32 %v1318_v12, %v542_v32 }
 0x2c7   :  { %v539_v35 = vpop.xlane.xlu0 %538 }
 0x2c8   :  { %1395 = vpow2.f32 %v563_v33  ;;  %v569_v36 = vmul.f32 1.442695, %v558_v34  ;;  %v557_v37 = vsub.f32 %v421_v16, %v539_v35  ;;  %v830_v33 = vld [vmem:[%s1719_s1 + $0x78] sm:$0xff]  ;;  %v829_v34 = vld [vmem:[%s1719_s1 + $0x70] sm:$0xff]  ;;  %v828_v35 = vld [vmem:[%s1719_s1 + $0x68] sm:$0xff] }
 0x2c9   :  { %v548_v38 = vpop.xlane.xlu1 %547  ;;  %1343 = vmatprep.subr.mxu1 %v830_v33 }
 0x2ca   :  { %1397 = vpow2.f32 %v569_v36  ;;  %v567_v39 = vmul.f32 1.442695, %v557_v37  ;;  %v560_v40 = vsub.f32 %v1323_v17, %v548_v38  ;;  %v827_v36 = vld [vmem:[%s1719_s1 + $0x60] sm:$0xff] }
 0x2cb   :  { %v545_v41 = vpop.xlane.xlu0 %544 }
 0x2cc   :  { %1399 = vpow2.f32 %v567_v39  ;;  %v573_v42 = vmul.f32 1.442695, %v560_v40  ;;  %v559_v43 = vsub.f32 %v511_v19, %v545_v41 }
 0x2cd   :  { %v554_v44 = vpop.xlane.xlu1 %553 }
 0x2ce   :  { %1401 = vpow2.f32 %v573_v42  ;;  %v571_v45 = vmul.f32 1.442695, %v559_v43  ;;  %v562_v46 = vsub.f32 %v1326_v21, %v554_v44 }
 0x2cf   :  { %v551_v47 = vpop.xlane.xlu0 %550 }
 0x2d0   :  { %1403 = vpow2.f32 %v571_v45  ;;  %v577_v48 = vmul.f32 1.442695, %v562_v46  ;;  %v561_v49 = vsub.f32 %v521_v24, %v551_v47 }
 0x2d2   :  { %1405 = vpow2.f32 %v577_v48  ;;  %v575_v50 = vmul.f32 1.442695, %v561_v49 }
 0x2d3   :  { %v1394_v51 = vpop.eup %1393 }
 0x2d4   :  { %1407 = vpow2.f32 %v575_v50  ;;  %v582_v52 = vsel %vm530_vm1, %v1394_v51, 0.0 }
 0x2d5   :  { %v1396_v53 = vpop.eup %1395  ;;  %583 = vadd.xlane.f32.xlu1 %v582_v52 }
 0x2d6   :  { %v579_v54 = vsel %vm530_vm1, %v1396_v53, 0.0 }
 0x2d7   :  { %v1398_v56 = vpop.eup %1397  ;;  %580 = vadd.xlane.f32.xlu0 %v579_v54 }
 0x2d8   :  { %v588_v57 = vsel %vm530_vm1, %v1398_v56, 0.0 }
 0x2d9   :  { %v1400_v61 = vpop.eup %1399  ;;  %589 = vadd.xlane.f32.xlu1 %v588_v57 }
 0x2da   :  { %v585_v62 = vsel %vm530_vm1, %v1400_v61, 0.0 }
 0x2db   :  { %v1402_v63 = vpop.eup %1401  ;;  %586 = vadd.xlane.f32.xlu0 %v585_v62 }
 0x2dc   :  { %v594_v2 = vsel %vm530_vm1, %v1402_v63, 0.0 }
 0x2dd   :  { %v1404_v3 = vpop.eup %1403  ;;  %595 = vadd.xlane.f32.xlu1 %v594_v2 }
 0x2de   :  { %v591_v4 = vsel %vm530_vm1, %v1404_v3, 0.0 }
 0x2df   :  { %v1406_v5 = vpop.eup %1405  ;;  %592 = vadd.xlane.f32.xlu0 %v591_v4 }
 0x2e0   :  { %v600_v6 = vsel %vm530_vm1, %v1406_v5, 0.0 }
 0x2e1   :  { %v1408_v7 = vpop.eup %1407  ;;  %601 = vadd.xlane.f32.xlu1 %v600_v6 }
 0x2e2   :  { %v597_v8 = vsel %vm530_vm1, %v1408_v7, 0.0 }
 0x2e3   :  { %598 = vadd.xlane.f32.xlu0 %v597_v8  ;;  %v966_v8 = vld [vmem:[%s1719_s1 + $0x98] sm:$0xff] }
 0x2e4   :  { %1354 = vmatprep.subr.mxu0 %v966_v8 }
 0x35e   :  { %v584_v9 = vpop.xlane.xlu1 %583 }
 0x35f   :  { %1409 = vrcp.f32 %v584_v9  ;;  %v965_v9 = vld [vmem:[%s1719_s1 + $0x90] sm:$0xff] }
 0x360   :  { %v581_v10 = vpop.xlane.xlu0 %580 }
 0x361   :  { %1411 = vrcp.f32 %v581_v10  ;;  %v964_v10 = vld [vmem:[%s1719_s1 + $0x88] sm:$0xff] }
 0x362   :  { %v590_v11 = vpop.xlane.xlu1 %589 }
 0x363   :  { %1413 = vrcp.f32 %v590_v11  ;;  %v963_v11 = vld [vmem:[%s1719_s1 + $0x80] sm:$0xff] }
 0x364   :  { %v587_v12 = vpop.xlane.xlu0 %586 }
 0x365   :  { %1415 = vrcp.f32 %v587_v12 }
 0x366   :  { %v596_v13 = vpop.xlane.xlu1 %595 }
 0x367   :  { %1417 = vrcp.f32 %v596_v13 }
 0x368   :  { %v593_v14 = vpop.xlane.xlu0 %592 }
 0x369   :  { %1419 = vrcp.f32 %v593_v14 }
 0x36a   :  { %v602_v15 = vpop.xlane.xlu1 %601 }
 0x36b   :  { %1421 = vrcp.f32 %v602_v15 }
 0x36c   :  { %v599_v16 = vpop.xlane.xlu0 %598  ;;  %v1410_v17 = vpop.eup %1409 }
 0x36d   :  { %1423 = vrcp.f32 %v599_v16  ;;  %v606_v20 = vmul.f32 %v1410_v17, %v1394_v51 }
 0x36e   :  { %v1412_v18 = vpop.eup %1411 }
 0x36f   :  { %v604_v19 = vmul.f32 %v1412_v18, %v1396_v53 }
 0x370   :  { %v1414_v21 = vpop.eup %1413 }
 0x371   :  { %1329 = vmatprep.mubr.msk.f32.mxu1 %vm530_vm1, %v604_v19  ;;  %v610_v24 = vmul.f32 %v1414_v21, %v1398_v56 }
 0x372   :  { %v1416_v22 = vpop.eup %1415  ;;  %1330 = vmatmul.mubr.msk.f32.vlgmr.msra.gmra.mxu1 %vm530_vm1, %v606_v20 }
 0x373   :  { %v608_v23 = vmul.f32 %v1416_v22, %v1400_v61  ;;  %1344 = vmatpush3.msra.mxu1 %v830_v33 }
 0x374   :  { %v1418_v25 = vpop.eup %1417  ;;  %1345 = vmatprep.subr.mxu1 %v829_v34 }
 0x375   :  { %1332 = vmatprep.mubr.msk.f32.mxu1 %vm530_vm1, %v608_v23  ;;  %v614_v28 = vmul.f32 %v1418_v25, %v1402_v63  ;;  %1346 = vmatpush3.msra.mxu1 %v829_v34  ;;  %v1207_v63 = vld [vmem:[%s1719_s1 + $0xe5] ss:$0 sm:$0xff]  ;;  %v1211_v34 = vld [vmem:[%s1719_s1 + $0xe7] ss:$0 sm:$0xff] }
 0x376   :  { %v1420_v26 = vpop.eup %1419  ;;  %1333 = vmatmul.mubr.msk.f32.gmra.mxu1 %vm530_vm1, %v610_v24  ;;  %1347 = vmatprep.subr.mxu1 %v828_v35 }
 0x377   :  { %v612_v27 = vmul.f32 %v1420_v26, %v1404_v3  ;;  %1348 = vmatpush3.msra.mxu1 %v828_v35 }
 0x378   :  { %v1422_v29 = vpop.eup %1421  ;;  %1349 = vmatprep.subr.mxu1 %v827_v36 }
 0x379   :  { %1337 = vmatprep.mubr.msk.f32.mxu0 %vm530_vm1, %v612_v27  ;;  %v618_v32 = vmul.f32 %v1422_v29, %v1406_v5  ;;  %1350 = vmatpush3.msra.mxu1 %v827_v36  ;;  %v1210_v29 = vld [vmem:[%s1719_s1 + $0xe6] ss:$0 sm:$0xff] }
 0x37a   :  { %v1424_v30 = vpop.eup %1423  ;;  %1338 = vmatmul.mubr.msk.f32.vlgmr.msra.gmra.mxu0 %vm530_vm1, %v614_v28 }
 0x37b   :  { %v616_v31 = vmul.f32 %v1424_v30, %v1408_v7  ;;  %1355 = vmatpush3.msra.mxu0 %v966_v8 }
 0x37c   :  { %1356 = vmatprep.subr.mxu0 %v965_v9 }
 0x37d   :  { %1340 = vmatprep.mubr.msk.f32.mxu0 %vm530_vm1, %v616_v31  ;;  %1357 = vmatpush3.msra.mxu0 %v965_v9 }
 0x37e   :  { %1341 = vmatmul.mubr.msk.f32.gmra.mxu0 %vm530_vm1, %v618_v32  ;;  %1358 = vmatprep.subr.mxu0 %v964_v10 }
 0x37f   :  { %1359 = vmatpush3.msra.mxu0 %v964_v10 }
 0x380   :  { %1360 = vmatprep.subr.mxu0 %v963_v11 }
 0x381   :  { %1361 = vmatpush3.msra.mxu0 %v963_v11 }
 0x432   :  { %v1331_v37 = vpop.f32.mrf.mxu1 }
 0x433   :  { %v814_v41 = vmul.f32 %v1331_v37, %v1565_v59 }
 0x434   :  { %v697_v38 = vpop.f32.mrf.mxu1 }
 0x435   :  { %v813_v39 = vmul.f32 %v697_v38, %v1552_v55  ;;  %v974_v38 = vld [vmem:[%s1719_s1 + $0xd8] sm:$0xff] }
 0x436   :  { %v1334_v40 = vpop.f32.mrf.mxu1  ;;  %1365 = vmatprep.subr.mxu1 %v974_v38 }
 0x437   :  { %v821_v43 = vadd.f32 %v814_v41, %v813_v39  ;;  %v816_v46 = vmul.f32 %v1334_v40, %v1570_v60  ;;  %v973_v39 = vld [vmem:[%s1719_s1 + $0xd0] sm:$0xff]  ;;  %v972_v40 = vld [vmem:[%s1719_s1 + $0xc8] sm:$0xff]  ;;  %v971_v41 = vld [vmem:[%s1719_s1 + $0xc0] sm:$0xff] }
 0x438   :  { %v707_v42 = vpop.f32.mrf.mxu1 }
 0x439   :  { %v815_v44 = vmul.f32 %v707_v42, %v1560_v58  ;;  %v970_v42 = vld [vmem:[%s1719_s1 + $0xb8] sm:$0xff] }
 0x43a   :  { %v1339_v45 = vpop.f32.mrf.mxu0 }
 0x43b   :  { %v823_v47 = vadd.f32 %v821_v43, %v815_v44  ;;  %v818_v52 = vmul.f32 %v1339_v45, %v1565_v59  ;;  %v969_v43 = vld [vmem:[%s1719_s1 + $0xb0] sm:$0xff]  ;;  %v968_v44 = vld [vmem:[%s1719_s1 + $0xa8] sm:$0xff]  ;;  %v967_v45 = vld [vmem:[%s1719_s1 + $0xa0] sm:$0xff] }
 0x43c   :  { %v794_v48 = vpop.f32.mrf.mxu0 }
 0x43d   :  { %v825_v49 = vadd.f32 %v823_v47, %v816_v46  ;;  %v817_v50 = vmul.f32 %v794_v48, %v1552_v55  ;;  %v1212_v46 = vld [vmem:[%s1719_s1 + $0xe8] ss:$0 sm:$0xff] }
 0x43e   :  { %v1342_v51 = vpop.f32.mrf.mxu0 }
 0x43f   :  { %1351 = vmatprep.mubr.msk.f32.mxu1 %vm16_vm0, %v825_v49  ;;  %v822_v54 = vadd.f32 %v818_v52, %v817_v50  ;;  %v820_v57 = vmul.f32 %v1342_v51, %v1570_v60 }
 0x440   :  { %v804_v53 = vpop.f32.mrf.mxu0 }
 0x441   :  { %v819_v56 = vmul.f32 %v804_v53, %v1560_v58 }
 0x443   :  { %v824_v61 = vadd.f32 %v822_v54, %v819_v56 }
 0x445   :  { %v826_v62 = vadd.f32 %v824_v61, %v820_v57 }
 0x447   :  { %1352 = vmatmul.mubr.msk.f32.vlgmr.msra.gmra.mxu1 %vm16_vm0, %v826_v62 }
 0x448   :  { %1366 = vmatpush3.msra.mxu1 %v974_v38 }
 0x449   :  { %1367 = vmatprep.subr.mxu1 %v973_v39 }
 0x44a   :  { %1368 = vmatpush3.msra.mxu1 %v973_v39 }
 0x44b   :  { %1369 = vmatprep.subr.mxu1 %v972_v40 }
 0x44c   :  { %1370 = vmatpush3.msra.mxu1 %v972_v40 }
 0x44d   :  { %1371 = vmatprep.subr.mxu1 %v971_v41 }
 0x44e   :  { %1372 = vmatpush3.msra.mxu1 %v971_v41 }
 0x44f   :  { %1373 = vmatprep.subr.mxu1 %v970_v42 }
 0x450   :  { %1374 = vmatpush3.msra.mxu1 %v970_v42 }
 0x451   :  { %1375 = vmatprep.subr.mxu1 %v969_v43 }
 0x452   :  { %1376 = vmatpush3.msra.mxu1 %v969_v43 }
 0x453   :  { %1377 = vmatprep.subr.mxu1 %v968_v44 }
 0x454   :  { %1378 = vmatpush3.msra.mxu1 %v968_v44 }
 0x455   :  { %1379 = vmatprep.subr.mxu1 %v967_v45 }
 0x456   :  { %1380 = vmatpush3.msra.mxu1 %v967_v45 }
 0x507   :  { %v1353_v55 = vpop.f32.mrf.mxu1 }
 0x508   :  { %v914_v2 = vadd.f32 %v1353_v55, %v1207_v63 }
 0x509   :  { %v908_v3 = vpop.f32.mrf.mxu1 }
 0x50a   :  { %v1644_v59 = vadd.f32 %v914_v2, %v1481_v1  ;;  %v909_v4 = vadd.f32 %v1207_v63, %v908_v3  ;;  %v1215_v2 = vld [vmem:[%s1719_s1 + $0xe9] ss:$0 sm:$0xff] }
 0x50c   :  { %v1647_v5 = vadd.f32 %v909_v4, %v1476_v0  ;;  %v924_v58 = vsel %vm16_vm0, %v1644_v59, 0.0  ;;  %v930_v60 = vmul.f32 %v1644_v59, %v1644_v59 }
 0x50d   :  { %925 = vadd.xlane.f32.xlu1 %v924_v58 }
 0x50e   :  { %v921_v6 = vsel %vm16_vm0, %v1647_v5, 0.0  ;;  %v929_v7 = vmul.f32 %v1647_v5, %v1647_v5  ;;  %v934_v1 = vsel %vm16_vm0, %v930_v60, 0.0 }
 0x50f   :  { %922 = vadd.xlane.f32.xlu0 %v921_v6 }
 0x510   :  { %v931_v0 = vsel %vm16_vm0, %v929_v7, 0.0 }
 0x511   :  { %935 = vadd.xlane.f32.xlu1 %v934_v1 }
 0x513   :  { %932 = vadd.xlane.f32.xlu0 %v931_v0 }
 0x596   :  { %v926_v12 = vpop.xlane.xlu1 %925 }
 0x597   :  { %v928_v13 = vmul.f32 0.03125, %v926_v12 }
 0x598   :  { %v923_v14 = vpop.xlane.xlu0 %922 }
 0x599   :  { %v927_v15 = vmul.f32 0.03125, %v923_v14  ;;  %v940_v17 = vmul.f32 %v928_v13, %v928_v13  ;;  %v944_v26 = vsub.f32 %v1644_v59, %v928_v13 }
 0x59a   :  { %v936_v16 = vpop.xlane.xlu1 %935 }
 0x59b   :  { %v938_v18 = vmul.f32 0.03125, %v936_v16  ;;  %v939_v20 = vmul.f32 %v927_v15, %v927_v15  ;;  %v943_v28 = vsub.f32 %v1647_v5, %v927_v15 }
 0x59c   :  { %v933_v19 = vpop.xlane.xlu0 %932 }
 0x59d   :  { %v942_v21 = vsub.f32 %v938_v18, %v940_v17  ;;  %v937_v22 = vmul.f32 0.03125, %v933_v19 }
 0x59f   :  { %v946_v23 = vadd.f32 1e-05, %v942_v21  ;;  %v941_v24 = vsub.f32 %v937_v22, %v939_v20 }
 0x5a1   :  { %1425 = vrsqrt.f32 %v946_v23  ;;  %v945_v25 = vadd.f32 1e-05, %v941_v24 }
 0x5a3   :  { %1427 = vrsqrt.f32 %v945_v25 }
 0x5ae   :  { %v1426_v27 = vpop.eup %1425 }
 0x5af   :  { %v950_v30 = vmul.f32 %v1426_v27, %v944_v26 }
 0x5b0   :  { %v1428_v31 = vpop.eup %1427 }
 0x5b1   :  { %v949_v32 = vmul.f32 %v1428_v31, %v943_v28  ;;  %v956_v33 = vmul.f32 %v1210_v29, %v950_v30 }
 0x5b3   :  { %v955_v35 = vmul.f32 %v1210_v29, %v949_v32  ;;  %v962_v37 = vadd.f32 %v1211_v34, %v956_v33 }
 0x5b5   :  { %v961_v36 = vadd.f32 %v1211_v34, %v955_v35 }
 0x5b7   :  { %1362 = vmatprep.mubr.msk.f32.mxu0 %vm16_vm0, %v961_v36 }
 0x5b8   :  { %1363 = vmatmul.mubr.msk.f32.vlgmr.msra.gmra.mxu0 %vm16_vm0, %v962_v37 }
 0x678   :  { %v1364_v47 = vpop.f32.mrf.mxu0 }
 0x679   :  { %v1058_v48 = vadd.f32 %v1364_v47, %v1212_v46 }
 0x67a   :  { %v1052_v49 = vpop.f32.mrf.mxu0 }
 0x67b   :  { %v1064_v50 = vmul.f32 0.70710677, %v1058_v48  ;;  %v1053_v51 = vadd.f32 %v1212_v46, %v1052_v49  ;;  %v1062_v62 = vmul.f32 0.5, %v1058_v48 }
 0x67d   :  { %1429 = verf.f32 %v1064_v50  ;;  %v1063_v52 = vmul.f32 0.70710677, %v1053_v51  ;;  %v1061_v57 = vmul.f32 0.5, %v1053_v51 }
 0x67f   :  { %1431 = verf.f32 %v1063_v52 }
 0x68a   :  { %v1430_v53 = vpop.eup %1429 }
 0x68b   :  { %v1068_v56 = vadd.f32 1.0, %v1430_v53 }
 0x68c   :  { %v1432_v54 = vpop.eup %1431 }
 0x68d   :  { %v1067_v61 = vadd.f32 1.0, %v1432_v54  ;;  %v1070_v55 = vmul.f32 %v1068_v56, %v1062_v62 }
 0x68f   :  { %v1069_v63 = vmul.f32 %v1067_v61, %v1061_v57 }
 0x691   :  { %1381 = vmatprep.mubr.msk.f32.mxu1 %vm1076_vm2, %v1069_v63 }
 0x692   :  { %1382 = vmatmul.mubr.msk.f32.vlgmr.msra.gmra.mxu1 %vm1076_vm2, %v1070_v55 }
 0x752   :  { %v1383_v3 = vpop.f32.mrf.mxu1 }
 0x753   :  { %v1155_v4 = vadd.f32 %v1383_v3, %v1215_v2 }
 0x754   :  { %v1149_v58 = vpop.f32.mrf.mxu1 }
 0x755   :  { %v1159_v60 = vadd.f32 %v1155_v4, %v1644_v59  ;;  %v1150_v6 = vadd.f32 %v1215_v2, %v1149_v58 }
 0x757   :  { %1161 = vst.msk [vmem:[#allocation2 + $0x8] sm:$0xff] %vm16_vm0, %v1159_v60  ;;  %v1158_v7 = vadd.f32 %v1150_v6, %v1647_v5 }
 0x759   :  { %1160 = vst.msk [vmem:[#allocation2] sm:$0xff] %vm16_vm0, %v1158_v7 }
 0x75a   :  { %1444 = shalt.err (!%p1441_p4)
}
 0x75b   :  { %s1456_s1 = smov 128   ;;  %s1457_s0 = smov 8  }
 0x75c   :  { %1173 = dma.vmem_to_hbm [thread:$0]  %s1168_s11, 256, %s1720_s2, [#allocation3], %s1456_s1, %s1456_s1, %s1457_s0  }
 0x75d   :  { %1453 = dma.done.wait [#allocation3], 256  }
 0x75e   :  { %1454 = vsyncadd [#allocation3], 4294967040 }
 0x75f   :  { %1177 = vsyncpa [#allocation3], 1 }

</bundles_post_ra>
